<compile_context>
chip_gen: v7x
topology: tpu7x:2x2x1
jax: 0.10.0
libtpu: 0.0.40
codegen_flags: <defaults>
</compile_context>

<pallas_src>
import functools
import math

import jax
import jax.numpy as jnp
from jax import lax
from jax.experimental import pallas as pl
from jax.experimental.pallas import tpu as pltpu

EPS = 1e-12                 # espnet LayerNorm / norm_epsilon default
SUB = 8                     # scan sub-chunk rows (SUB * d_state = MXU K = 128)
SCAN_CHUNK = 256            # L-chunk for the selective scan
DWCONV_CHUNK = 512          # L-chunk for the depthwise conv
MXU_DTYPE = jnp.bfloat16    # matmul operand dtype (f32 accumulation); set to
                            # jnp.float32 to reproduce exact fp32 numerics.


def _round_up(x, m):
    return (x + m - 1) // m * m


def _cparams(sem, blocks, scratch_bytes=0):
    """CompilerParams with vmem_limit_bytes derived from the actual tiles."""
    bb = sum(math.prod(s) * jnp.dtype(d).itemsize for s, d in blocks)
    need = 2 * bb + scratch_bytes + (4 << 20)       # double-buffering + slack
    return pltpu.CompilerParams(
        dimension_semantics=sem,
        vmem_limit_bytes=int(min(max(need, 32 << 20), 100 << 20)))


# -----------------------------------------------------------------------------
# Fused (add + LayerNorm +) matmul (+ activation + LayerNorm) kernel, M-tiled,
# bf16 MXU operands with f32 accumulation.
# -----------------------------------------------------------------------------
def _fused_mm_kernel(*refs, act, eps, has_res, has_ln, has_pln, out_res):
    it = iter(refs)
    x_ref = next(it)
    r_ref = next(it) if has_res else None
    g_ref = next(it) if has_ln else None
    bt_ref = next(it) if has_ln else None
    w_ref = next(it)
    b_ref = next(it)
    pg_ref = next(it) if has_pln else None
    pb_ref = next(it) if has_pln else None
    o_ref = next(it)
    res_ref = next(it) if out_res else None

    a = x_ref[...].astype(jnp.float32)
    if has_res:
        a = a + r_ref[...].astype(jnp.float32)
    if out_res:
        res_ref[...] = a.astype(res_ref.dtype)
    if has_ln:
        mu = jnp.mean(a, axis=-1, keepdims=True)
        var = jnp.mean(jnp.square(a - mu), axis=-1, keepdims=True)
        a = (a - mu) * lax.rsqrt(var + eps)
        a = a * g_ref[...] + bt_ref[...]
    acc = jnp.dot(a.astype(MXU_DTYPE), w_ref[...].astype(MXU_DTYPE),
                  preferred_element_type=jnp.float32)
    acc = acc + b_ref[...]
    if act == "relu":
        acc = jnp.maximum(acc, 0.0)
    elif act == "silu":
        acc = acc * jax.nn.sigmoid(acc)
    if has_pln:                                     # fused output LayerNorm
        mu = jnp.mean(acc, axis=-1, keepdims=True)
        var = jnp.mean(jnp.square(acc - mu), axis=-1, keepdims=True)
        acc = (acc - mu) * lax.rsqrt(var + eps) * pg_ref[...] + pb_ref[...]
    o_ref[...] = acc.astype(o_ref.dtype)


def _ktiled_mm_kernel(x_ref, w_ref, b_ref, o_ref, acc_ref, *, act):
    @pl.when(pl.program_id(1) == 0)
    def _():
        acc_ref[...] = jnp.zeros_like(acc_ref)

    acc_ref[...] += jnp.dot(x_ref[...].astype(MXU_DTYPE),
                            w_ref[...].astype(MXU_DTYPE),
                            preferred_element_type=jnp.float32)

    @pl.when(pl.program_id(1) == pl.num_programs(1) - 1)
    def _():
        acc = acc_ref[...] + b_ref[...]
        if act == "relu":
            acc = jnp.maximum(acc, 0.0)
        elif act == "silu":
            acc = acc * jax.nn.sigmoid(acc)
        o_ref[...] = acc.astype(o_ref.dtype)


def fused_linear(x, w, b=None, *, act="none", ln=None, res=None, want_res=False,
                 post_ln=None, out_dtype=None, eps=EPS, tm=256, tk=512):
    """o = post_LN(act(LN(x [+ res]) @ w + b)); optionally also return x + res.

    Plain matmuls whose K exceeds `tk` are split along a K grid axis with an
    f32 VMEM accumulator (keeps weight tiles within scoped VMEM on v5e/v7x).
    """
    M, K = x.shape
    K2, N = w.shape
    assert K == K2
    out_dtype = out_dtype or x.dtype
    if b is None:
        b = jnp.zeros((N,), jnp.float32)
    b2 = b.reshape(1, N).astype(jnp.float32)

    plain = ln is None and res is None and post_ln is None and not want_res
    if plain and K > tk:
        # ---------------- K-tiled path (conv2 im2col / embed_out) ------------
        Kp = _round_up(K, tk)
        if Kp != K:                                   # zero-pad K (exact result)
            x = jnp.pad(x, ((0, 0), (0, Kp - K)))
            w = jnp.pad(w, ((0, Kp - K), (0, 0)))
        tm_eff = min(tm, _round_up(max(M, 1), 8))
        grid = (pl.cdiv(M, tm_eff), Kp // tk)
        blocks = [((tm_eff, tk), x.dtype), ((tk, N), w.dtype),
                  ((1, N), jnp.float32), ((tm_eff, N), out_dtype)]
        return pl.pallas_call(
            functools.partial(_ktiled_mm_kernel, act=act),
            grid=grid,
            in_specs=[pl.BlockSpec((tm_eff, tk), lambda i, k: (i, k)),
                      pl.BlockSpec((tk, N), lambda i, k: (k, 0)),
                      pl.BlockSpec((1, N), lambda i, k: (0, 0))],
            out_specs=pl.BlockSpec((tm_eff, N), lambda i, k: (i, 0)),
            out_shape=jax.ShapeDtypeStruct((M, N), out_dtype),
            scratch_shapes=[pltpu.VMEM((tm_eff, N), jnp.float32)],
            compiler_params=_cparams(("parallel", "arbitrary"), blocks,
                                     scratch_bytes=tm_eff * N * 4),
        )(x, w, b2)

    # ---------------- single-K path: fused LN / residual / post-LN -----------
    tm_eff = min(tm, _round_up(max(M, 1), 8))
    grid = (pl.cdiv(M, tm_eff),)

    inputs = [x]
    in_specs = [pl.BlockSpec((tm_eff, K), lambda i: (i, 0))]
    blocks = [((tm_eff, K), x.dtype)]
    if res is not None:
        inputs.append(res)
        in_specs.append(pl.BlockSpec((tm_eff, K), lambda i: (i, 0)))
        blocks.append(((tm_eff, K), res.dtype))
    if ln is not None:
        g, bt = ln
        inputs += [g.reshape(1, K).astype(jnp.float32),
                   bt.reshape(1, K).astype(jnp.float32)]
        in_specs += [pl.BlockSpec((1, K), lambda i: (0, 0))] * 2
        blocks += [((1, K), jnp.float32)] * 2
    inputs += [w, b2]
    in_specs += [pl.BlockSpec((K, N), lambda i: (0, 0)),
                 pl.BlockSpec((1, N), lambda i: (0, 0))]
    blocks += [((K, N), w.dtype), ((1, N), jnp.float32)]
    if post_ln is not None:
        pg, pb = post_ln
        inputs += [pg.reshape(1, N).astype(jnp.float32),
                   pb.reshape(1, N).astype(jnp.float32)]
        in_specs += [pl.BlockSpec((1, N), lambda i: (0, 0))] * 2
        blocks += [((1, N), jnp.float32)] * 2

    out_shape = [jax.ShapeDtypeStruct((M, N), out_dtype)]
    out_specs = [pl.BlockSpec((tm_eff, N), lambda i: (i, 0))]
    blocks.append(((tm_eff, N), out_dtype))
    if want_res:
        out_shape.append(jax.ShapeDtypeStruct((M, K), out_dtype))
        out_specs.append(pl.BlockSpec((tm_eff, K), lambda i: (i, 0)))
        blocks.append(((tm_eff, K), out_dtype))

    kernel = functools.partial(
        _fused_mm_kernel, act=act, eps=eps, has_res=res is not None,
        has_ln=ln is not None, has_pln=post_ln is not None, out_res=want_res)

    return pl.pallas_call(
        kernel,
        grid=grid,
        in_specs=in_specs,
        out_specs=tuple(out_specs) if want_res else out_specs[0],
        out_shape=tuple(out_shape) if want_res else out_shape[0],
        compiler_params=_cparams(("parallel",), blocks),
    )(*inputs)


# -----------------------------------------------------------------------------
# Depthwise causal conv1d + SiLU, L-chunked with an 8-row VMEM history buffer
# carrying the causal halo across chunks.
# -----------------------------------------------------------------------------
def _dwconv_silu_kernel(x_ref, w_ref, b_ref, o_ref, xb_ref, *, K, TL):
    D = o_ref.shape[-1]

    @pl.when(pl.program_id(1) == 0)
    def _():                                         # zero history at chunk 0
        xb_ref[0:8, :] = jnp.zeros((8, D), jnp.float32)

    # stage the chunk behind the 8-row history window: xb row (i + 8) == x[i]
    xb_ref[pl.ds(8, TL), :] = x_ref[...].astype(jnp.float32)

    w = w_ref[...].astype(jnp.float32)               # (K, D)
    acc = b_ref[...].astype(jnp.float32)             # (1, D), broadcasts
    for k in range(K):                               # out[t] = sum_k w[k]*x[t-(K-1)+k]
        off = 8 - (K - 1) + k
        acc = acc + xb_ref[pl.ds(off, TL), :] * w[k:k + 1, :]

    # carry the last rows of this chunk as the next chunk's history
    xb_ref[0:8, :] = xb_ref[pl.ds(TL, 8), :]
    o_ref[...] = (acc * jax.nn.sigmoid(acc)).astype(o_ref.dtype)


def causal_dwconv_silu(x_src, x_blk, w, b, d_inner, *, max_chunk=DWCONV_CHUNK):
    """x_src:(B,L,C); the conv input is the channel block `x_blk` (width
    d_inner).  w:(K,d_inner) depthwise taps (PyTorch Conv1d stores
    (d_inner,1,K): transpose when loading real weights), b:(d_inner,)."""
    Bsz, L, _ = x_src.shape
    K = w.shape[0]
    TL = min(max_chunk, _round_up(L, SUB))
    n_l = pl.cdiv(L, TL)
    blocks = [((TL, d_inner), x_src.dtype), ((K, d_inner), w.dtype),
              ((1, d_inner), jnp.float32), ((TL, d_inner), x_src.dtype)]
    return pl.pallas_call(
        functools.partial(_dwconv_silu_kernel, K=K, TL=TL),
        grid=(Bsz, n_l),
        in_specs=[
            pl.BlockSpec((None, TL, d_inner),
                         lambda bi, li, _c=x_blk: (bi, li, _c)),
            pl.BlockSpec((K, d_inner), lambda bi, li: (0, 0)),
            pl.BlockSpec((1, d_inner), lambda bi, li: (0, 0)),
        ],
        out_specs=pl.BlockSpec((None, TL, d_inner), lambda bi, li: (bi, li, 0)),
        out_shape=jax.ShapeDtypeStruct((Bsz, L, d_inner), x_src.dtype),
        scratch_shapes=[pltpu.VMEM((TL + 8, d_inner), jnp.float32)],
        compiler_params=_cparams(("parallel", "arbitrary"), blocks,
                                 scratch_bytes=(TL + 8) * d_inner * 4),
    )(x_src, w, b.reshape(1, d_inner).astype(jnp.float32))


# -----------------------------------------------------------------------------
# Selective scan: grid = (batch, L-chunk), state in VMEM scratch.  Per 8-row
# sub-chunk: all non-recurrent math (softplus, exp(dt*A), B (x) dt*u outer
# products, gate, D*u) is hoisted out of the recurrence; the serial chain is
# SUB pure-VPU FMAs; the eight C.h products collapse into one K=128 MXU pass
# against the stacked states.
# -----------------------------------------------------------------------------
def _scan_kernel(u_ref, xdbl_ref, z_ref, A_ref, D_ref, y_ref, h_ref, hall_ref,
                 *, n_sub, d_inner, d_state, seq_len, chunk):
    @pl.when(pl.program_id(1) == 0)
    def _():
        h_ref[...] = jnp.zeros_like(h_ref)

    A = A_ref[...]                                   # (d_state, d_inner), negative
    Dv = D_ref[...]                                  # (1, d_inner)
    l_base = pl.program_id(1) * chunk

    # static block-diagonal selection mask for the single C @ H_stack matmul
    bd_mask = (lax.broadcasted_iota(jnp.int32, (SUB, SUB * d_state), 0) ==
               lax.broadcasted_iota(jnp.int32, (SUB, SUB * d_state), 1)
               // d_state)

    def body(c, carry):
        off = pl.multiple_of(c * SUB, SUB)
        row = lax.broadcasted_iota(jnp.int32, (SUB, 1), 0)
        valid = (l_base + off + row) < seq_len       # mask padded tail rows

        u_s = jnp.where(valid, u_ref[pl.ds(off, SUB), :].astype(jnp.float32), 0.0)
        xd = xdbl_ref[pl.ds(off, SUB), :].astype(jnp.float32)
        dt_s = jnp.where(valid, jax.nn.softplus(xd[:, :d_inner]), 0.0)
        B_s = jnp.where(valid, xd[:, d_inner:d_inner + d_state], 0.0)
        C_s = xd[:, d_inner + d_state:d_inner + 2 * d_state]
        z_s = z_ref[pl.ds(off, SUB), :].astype(jnp.float32)

        dtu = dt_s * u_s                                           # (SUB, d_inner)
        gate = z_s * jax.nn.sigmoid(z_s)
        skip = Dv * u_s

        # hoisted, non-recurrent 3-D tensors (EUP / VPU, off the serial chain)
        dA = jnp.exp(dt_s[:, None, :] * A[None, :, :])             # (SUB, d_state, d_inner)
        dBu = B_s[:, :, None] * dtu[:, None, :]                    # (SUB, d_state, d_inner)

        # serial chain: SUB fused multiply-adds on (d_state, d_inner) tiles
        h = h_ref[...]
        for k in range(SUB):
            h = dA[k] * h + dBu[k]
            hall_ref[k * d_state:(k + 1) * d_state, :] = h
        h_ref[...] = h

        # one (SUB, SUB*d_state) @ (SUB*d_state, d_inner) MXU pass for C.h_t
        C_bd = jnp.where(bd_mask, jnp.concatenate([C_s] * SUB, axis=-1), 0.0)
        y_c = jnp.dot(C_bd, hall_ref[...], preferred_element_type=jnp.float32)
        y_ref[pl.ds(off, SUB), :] = ((y_c + skip) * gate).astype(y_ref.dtype)
        return carry

    lax.fori_loop(0, n_sub, body, 0)


def selective_scan(u, x_dbl, z_sb, A, D, *, max_chunk=SCAN_CHUNK):
    """u:(B,L,d_inner) conv output; x_dbl:(B,L,d_inner+2*d_state) folded
    x_proj/dt_proj output laid out [dt | B | C] (dt pre-softplus, bias added);
    z given as (src array, column-block) so it is read straight out of the
    in_proj output; A:(d_inner,d_state) already negative (A = -exp(A_log) for
    real checkpoints); D:(d_inner,)."""
    Bsz, L, d_inner = u.shape
    d_state = A.shape[1]
    W = x_dbl.shape[-1]
    z_src, z_blk = z_sb

    TL = min(max_chunk, _round_up(L, SUB))
    n_l = pl.cdiv(L, TL)
    A_t = jnp.transpose(A).astype(jnp.float32)       # (d_state, d_inner)
    Dv = D.reshape(1, d_inner).astype(jnp.float32)

    blocks = [((TL, d_inner), u.dtype), ((TL, W), x_dbl.dtype),
              ((TL, d_inner), z_src.dtype), ((d_state, d_inner), jnp.float32),
              ((1, d_inner), jnp.float32), ((TL, d_inner), u.dtype)]
    scratch = (d_state * d_inner + SUB * d_state * d_inner) * 4

    # TODO(synk): on v7x (2 TCs) a second "parallel" grid axis over d_inner
    # channel tiles would keep both cores busy at small batch.
    return pl.pallas_call(
        functools.partial(_scan_kernel, n_sub=TL // SUB, d_inner=d_inner,
                          d_state=d_state, seq_len=L, chunk=TL),
        grid=(Bsz, n_l),
        in_specs=[
            pl.BlockSpec((None, TL, d_inner), lambda b, l: (b, l, 0)),
            pl.BlockSpec((None, TL, W), lambda b, l: (b, l, 0)),
            pl.BlockSpec((None, TL, d_inner), lambda b, l, _c=z_blk: (b, l, _c)),
            pl.BlockSpec((d_state, d_inner), lambda b, l: (0, 0)),
            pl.BlockSpec((1, d_inner), lambda b, l: (0, 0)),
        ],
        out_specs=pl.BlockSpec((None, TL, d_inner), lambda b, l: (b, l, 0)),
        out_shape=jax.ShapeDtypeStruct((Bsz, L, d_inner), u.dtype),
        scratch_shapes=[pltpu.VMEM((d_state, d_inner), jnp.float32),
                        pltpu.VMEM((SUB * d_state, d_inner), jnp.float32)],
        compiler_params=_cparams(("parallel", "arbitrary"), blocks,
                                 scratch_bytes=scratch),
    )(u, x_dbl, z_src, A_t, Dv)


# -----------------------------------------------------------------------------
# Glue (im2col / reshapes / parameter plumbing) in plain JAX
# -----------------------------------------------------------------------------
def im2col(x, k, stride):
    """x:(B,H,W,C) NHWC -> patches (B,Ho,Wo,C*k*k) with (c, kh, kw) ordering."""
    B, H, Wd, C = x.shape
    Ho = (H - k) // stride + 1
    Wo = (Wd - k) // stride + 1
    cols = []
    for kh in range(k):
        for kw in range(k):
            cols.append(x[:, kh:kh + stride * (Ho - 1) + 1:stride,
                          kw:kw + stride * (Wo - 1) + 1:stride, :])
    p = jnp.stack(cols, axis=3)                 # (B,Ho,Wo,k*k,C)
    p = jnp.transpose(p, (0, 1, 2, 4, 3))       # (B,Ho,Wo,C,k*k)
    return p.reshape(B, Ho, Wo, C * k * k), Ho, Wo


def _maybe_col_block(x3, start, width):
    """(src, blk) such that src[..., blk*width:(blk+1)*width] == x3[..., start:
    start+width]; falls back to an XLA slice when not lane-block expressible."""
    if width % 128 == 0 and start % width == 0:
        return x3, start // width
    return x3[..., start:start + width], 0


def mamba_block(x, residual, p, B, L):
    """mamba_ssm Block (non-fused add-norm).  x/residual: (B*L, d_model)."""
    d_inner = p["conv_w"].shape[-1]
    d_state = p["A"].shape[1]
    dt_rank = p["dt_proj_w"].shape[0]

    # fused (add +) LayerNorm + in_proj; also emits the running residual
    if residual is None:
        xz = fused_linear(x, p["in_proj_w"], ln=(p["norm_g"], p["norm_b"]))
        new_res = x
    else:
        xz, new_res = fused_linear(x, p["in_proj_w"],
                                   ln=(p["norm_g"], p["norm_b"]),
                                   res=residual, want_res=True)
    xz3 = xz.reshape(B, L, 2 * d_inner)

    # depthwise causal conv + SiLU on the x half of xz
    xi_src, xi_blk = _maybe_col_block(xz3, 0, d_inner)
    xc = causal_dwconv_silu(xi_src, xi_blk, p["conv_w"], p["conv_b"], d_inner)

    # x_proj with dt_proj folded in: columns [0:d_inner)=dt (pre-softplus,
    # bias applied), [d_inner:d_inner+d_state)=B, rest=C.
    w_fold = jnp.concatenate(
        [p["x_proj_w"][:, :dt_rank] @ p["dt_proj_w"], p["x_proj_w"][:, dt_rank:]],
        axis=1)
    b_fold = jnp.concatenate(
        [p["dt_proj_b"], jnp.zeros((2 * d_state,), p["dt_proj_b"].dtype)])
    x_dbl = fused_linear(xc.reshape(B * L, d_inner), w_fold, b_fold)
    x_dbl3 = x_dbl.reshape(B, L, d_inner + 2 * d_state)

    z_sb = _maybe_col_block(xz3, d_inner, d_inner)
    y = selective_scan(xc, x_dbl3, z_sb, p["A"], p["D"])
    out = fused_linear(y.reshape(B * L, d_inner), p["out_proj_w"])
    return out, new_res


def mamba_encoder_forward(params, xs_pad, ilens):
    """Forward of MambaEncoder (input_layer='conv2d_m', eval mode)."""
    B, T, idim = xs_pad.shape
    d_model = params["d_model"]

    # masks = ~make_pad_mask(ilens)[:, None, :]
    t_idx = jnp.arange(T)[None, :]
    masks = (t_idx < ilens[:, None])[:, None, :]                  # (B,1,T) bool

    # ---- Conv2dSubsamplingM: im2col + tiled matmul kernels ----
    x = xs_pad[:, :, :, None]                                     # NHWC (B,T,idim,1)
    p1, T1, F1 = im2col(x, 3, 2)
    c1 = fused_linear(p1.reshape(B * T1 * F1, -1), params["conv1_w"],
                      params["conv1_b"], act="relu", out_dtype=jnp.bfloat16)
    c1 = c1.reshape(B, T1, F1, d_model)
    # bf16 patches halve the HBM traffic of the 9x-duplicated activations.
    p2, T2, F2 = im2col(c1, 3, 2)
    c2 = fused_linear(p2.reshape(B * T2 * F2, -1), params["conv2_w"],
                      params["conv2_b"], act="relu", out_dtype=jnp.float32)
    c2 = c2.reshape(B, T2, F2, d_model)
    feat = jnp.transpose(c2, (0, 1, 3, 2)).reshape(B, T2, d_model * F2)
    x = fused_linear(feat.reshape(B * T2, -1), params["embed_out_w"],
                     params["embed_out_b"])
    masks = masks[:, :, :-2:2][:, :, :-2:2]                       # subsampled mask
    L = T2
    # TODO(synk): the im2col duplication still round-trips HBM once; an
    # overlapping-block index_map on the conv matmul would remove it entirely.

    # ---- Mamba layers ----
    residual = None
    for lp in params["layers"]:
        x, residual = mamba_block(x, residual, lp, B, L)

    # ---- final add + norm_f + encoder_out_embed (Linear+Swish+LayerNorm) ----
    ln_f = (params["norm_f_g"], params["norm_f_b"])
    pln = (params["eoe_ln_g"], params["eoe_ln_b"])
    if residual is None:
        x = fused_linear(x, params["eoe_w"], params["eoe_b"], act="silu",
                         ln=ln_f, post_ln=pln)
    else:
        x = fused_linear(x, params["eoe_w"], params["eoe_b"], act="silu",
                         ln=ln_f, res=residual, post_ln=pln)
    x = x.reshape(B, L, d_model)

    olens = masks[:, 0, :].sum(axis=1).astype(jnp.int32)
    return x, olens, None


# -----------------------------------------------------------------------------
# Deterministic synthetic parameter init (shapes per module __init__)
# -----------------------------------------------------------------------------
def init_params(key, idim, d_model, num_blocks, d_state=16, d_conv=4, expand=2):
    d_inner = expand * d_model
    dt_rank = math.ceil(d_model / 16)
    F2 = ((idim - 1) // 2 - 1) // 2
    keys = iter(jax.random.split(key, 16 + 8 * num_blocks))

    def w(shape, scale=0.02):
        return (scale * jax.random.normal(next(keys), shape)).astype(jnp.float32)

    layers = []
    for _ in range(num_blocks):
        layers.append(dict(
            norm_g=jnp.ones((d_model,), jnp.float32),
            norm_b=jnp.zeros((d_model,), jnp.float32),
            in_proj_w=w((d_model, 2 * d_inner)),                  # bias=False
            conv_w=w((d_conv, d_inner), 0.1),                     # depthwise taps
            conv_b=jnp.zeros((d_inner,), jnp.float32),
            x_proj_w=w((d_inner, dt_rank + 2 * d_state)),         # bias=False
            dt_proj_w=w((dt_rank, d_inner), 0.1),
            dt_proj_b=0.01 * jnp.ones((d_inner,), jnp.float32),
            # A stored already-negative; real checkpoints: A = -exp(A_log)
            A=-jnp.tile(jnp.arange(1, d_state + 1, dtype=jnp.float32)[None, :],
                        (d_inner, 1)),
            D=jnp.ones((d_inner,), jnp.float32),
            out_proj_w=w((d_inner, d_model)),                     # bias=False
        ))

    return dict(
        d_model=d_model,
        conv1_w=w((1 * 3 * 3, d_model)),
        conv1_b=jnp.zeros((d_model,), jnp.float32),
        conv2_w=w((d_model * 3 * 3, d_model)),
        conv2_b=jnp.zeros((d_model,), jnp.float32),
        embed_out_w=w((d_model * F2, d_model)),
        embed_out_b=jnp.zeros((d_model,), jnp.float32),
        layers=layers,
        norm_f_g=jnp.ones((d_model,), jnp.float32),
        norm_f_b=jnp.zeros((d_model,), jnp.float32),
        eoe_w=w((d_model, d_model)),
        eoe_b=jnp.zeros((d_model,), jnp.float32),
        eoe_ln_g=jnp.ones((d_model,), jnp.float32),
        eoe_ln_b=jnp.zeros((d_model,), jnp.float32),
    )


if __name__ == "__main__":
    key = jax.random.PRNGKey(0)
    B, T, idim = 2, 16, 16
    d_model, num_blocks = 64, 2

    kp, kx = jax.random.split(key)
    params = init_params(kp, idim, d_model, num_blocks)
    xs_pad = jax.random.normal(kx, (B, T, idim), jnp.float32)
    ilens = jnp.array([16, 12], jnp.int32)

    out, olens, _ = mamba_encoder_forward(params, xs_pad, ilens)
    jax.block_until_ready(out)
    jax.block_until_ready(olens)

    T_out = ((T - 1) // 2 - 1) // 2
    assert out.shape == (B, T_out, d_model), out.shape
    assert olens.shape == (B,), olens.shape
    assert bool(jnp.all(jnp.isfinite(out)))
    # TODO(synk): dropout layers are identity (eval mode); interctc / lookahead
    # branches unused (defaults).  Matmuls use bf16 operands with f32
    # accumulation (set MXU_DTYPE=jnp.float32 for exact fp32 reference math).
    print("KERNEL_OK")
</pallas_src>

<mosaic_0001>
module attributes {stable_mosaic.version = 11 : i64} {
  func.func @_fused_mm_kernel(%arg0: i32, %arg1: memref<104x9xf32, #tpu.memory_space<vmem>>, %arg2: memref<9x64xf32, #tpu.memory_space<vmem>>, %arg3: memref<1x64xf32, #tpu.memory_space<vmem>>, %arg4: memref<104x64xbf16, #tpu.memory_space<vmem>>) attributes {dimension_semantics = [#tpu.dimension_semantics<parallel>], iteration_bounds = array<i64: 1>, scalar_prefetch = 0 : i64, scratch_operands = 0 : i64, tpu.core_type = #tpu.core_type<tc>, window_params = [{transform_indices = @transform_0, window_bounds = array<i64: 104, 9>}, {pipeline_mode = #tpu.pipeline_mode<synchronous>, transform_indices = @transform_1, window_bounds = array<i64: 9, 64>}, {pipeline_mode = #tpu.pipeline_mode<synchronous>, transform_indices = @transform_2, window_bounds = array<i64: 1, 64>}, {transform_indices = @transform_3, window_bounds = array<i64: 104, 64>}]} {
    %c0 = arith.constant 0 : index
    %c0_0 = arith.constant 0 : index
    %0 = vector.load %arg1[%c0, %c0_0] : memref<104x9xf32, #tpu.memory_space<vmem>>, vector<104x9xf32>
    %1 = arith.truncf %0 : vector<104x9xf32> to vector<104x9xbf16>
    %c0_1 = arith.constant 0 : index
    %c0_2 = arith.constant 0 : index
    %2 = vector.load %arg2[%c0_1, %c0_2] : memref<9x64xf32, #tpu.memory_space<vmem>>, vector<9x64xf32>
    %3 = arith.truncf %2 : vector<9x64xf32> to vector<9x64xbf16>
    %cst = arith.constant dense<0.000000e+00> : vector<104x64xf32>
    %4 = tpu.matmul %1, %3, %cst {dimension_numbers = #tpu.dot_dimension_numbers<[1], [0], [0], [1], [0, 0, 1, 1], [], []>} : vector<104x9xbf16>, vector<9x64xbf16>, vector<104x64xf32> -> vector<104x64xf32>
    %c0_3 = arith.constant 0 : index
    %c0_4 = arith.constant 0 : index
    %5 = vector.load %arg3[%c0_3, %c0_4] : memref<1x64xf32, #tpu.memory_space<vmem>>, vector<1x64xf32>
    %6 = vector.broadcast %5 : vector<1x64xf32> to vector<104x64xf32>
    %7 = arith.addf %4, %6 : vector<104x64xf32>
    %cst_5 = arith.constant 0.000000e+00 : f32
    %8 = vector.broadcast %cst_5 : f32 to vector<104x64xf32>
    %9 = arith.maximumf %7, %8 : vector<104x64xf32>
    %10 = arith.truncf %9 : vector<104x64xf32> to vector<104x64xbf16>
    %c0_6 = arith.constant 0 : index
    %c0_7 = arith.constant 0 : index
    %11 = vector.load %arg4[%c0_6, %c0_7] : memref<104x64xbf16, #tpu.memory_space<vmem>>, vector<104x64xbf16>
    tpu.vector_store %arg4[%c0_6, %c0_7], %10 {strides = array<i32>} : memref<104x64xbf16, #tpu.memory_space<vmem>>, vector<104x64xbf16>,
    return
  }
  func.func @transform_0(%arg0: i32) -> (i32, i32) {
    %c0_i32 = arith.constant 0 : i32
    %c0_i32_0 = arith.constant 0 : i32
    return %arg0, %c0_i32 : i32, i32
  }
  func.func @transform_1(%arg0: i32) -> (i32, i32) {
    %c0_i32 = arith.constant 0 : i32
    %c0_i32_0 = arith.constant 0 : i32
    %c0_i32_1 = arith.constant 0 : i32
    return %c0_i32, %c0_i32_0 : i32, i32
  }
  func.func @transform_2(%arg0: i32) -> (i32, i32) {
    %c0_i32 = arith.constant 0 : i32
    %c0_i32_0 = arith.constant 0 : i32
    %c0_i32_1 = arith.constant 0 : i32
    return %c0_i32, %c0_i32_0 : i32, i32
  }
  func.func @transform_3(%arg0: i32) -> (i32, i32) {
    %c0_i32 = arith.constant 0 : i32
    %c0_i32_0 = arith.constant 0 : i32
    return %arg0, %c0_i32 : i32, i32
  }
}

</mosaic_0001>

<bundles_post_ra>
// kernel: tpu_custom_call.1
= control target key start
LH: loop header
LB: loop body
LE: loop exit
PB: predicated region body
PF: predicated region fallthrough
CT: control target
= control target key end

     0   :  { %vm67_vm0 = vcmask 1043456   ;;  %vm68_vm1 = vcmask 1044480   ;;  %v323_v0 = vmov 0.0   ;;  %v324_v3 = vmov 65535   ;;  %s475_s1 = inlined_call_operand.vmem [shape: f32[9,64], index: 1, kind: input, shape index: {}]   ;;  %s476_s0 = inlined_call_operand.vmem [shape: f32[98,9], index: 0, kind: input, shape index: {}]   ;;  %s477_s2 = inlined_call_operand.vmem [shape: f32[1,64], index: 2, kind: input, shape index: {}]   ;;  %s478_s3 = inlined_call_operand.vmem [shape: bf16[98,64], index: 3, kind: output, shape index: {}]  }
   0x1   :  { %288 = vmatprep.subr.bf16.mxu0 %v323_v0  ;;  %v35_v1 = vld [vmem:[%s475_s1] sm:$0xff]  ;;  %v36_v2 = vld [vmem:[%s475_s1 + $0x8] sm:$0x1]  ;;  %v69_v4 = vsel %vm67_vm0, 4294967295, %v324_v3  ;;  %318 = vmatprep.subr.bf16.mxu1 %v323_v0  ;;  %vm325_vm2 = vmmov 0   ;;  %vm45_vm3 = vcmask 72704  }
   0x2   :  { %v15_v5 = vld [vmem:[%s476_s0] sm:$0xff]  ;;  %v37_v6 = vpack.c.bf16 %v36_v2, %v35_v1  ;;  %v70_v7 = vsel %vm68_vm1, %v69_v4, 0  ;;  %290 = vmatprep.mubr.msk.bf16.mxu0 %vm325_vm2, %v323_v0  ;;  %v16_v8 = vld [vmem:[%s476_s0 + $0x8] sm:$0xff]  ;;  %306 = vmatprep.mubr.msk.bf16.mxu1 %vm325_vm2, %v323_v0  ;;  %v17_v14 = vld [vmem:[%s476_s0 + $0x10] sm:$0xff]  ;;  %vm228_vm4 = vcmask 519168  }
   0x3   :  { %v23_v9 = vld [vmem:[%s476_s0 + $0x40] sm:$0xff]  ;;  %v24_v10 = vld [vmem:[%s476_s0 + $0x48] sm:$0xff]  ;;  %v28_v12 = vpack.c.bf16 %v16_v8, %v15_v5  ;;  %v18_v15 = vld [vmem:[%s476_s0 + $0x18] sm:$0xff] }
   0x4   :  { %v72_v11 = vand.u32 %v70_v7, %v37_v6  ;;  %v32_v13 = vpack.c.bf16 %v24_v10, %v23_v9  ;;  %v25_v16 = vld [vmem:[%s476_s0 + $0x50] sm:$0xff]  ;;  %v26_v17 = vld [vmem:[%s476_s0 + $0x58] sm:$0xff]  ;;  %v29_v18 = vpack.c.bf16 %v18_v15, %v17_v14  ;;  %v19_v20 = vld [vmem:[%s476_s0 + $0x20] sm:$0xff] }
   0x5   :  { %v33_v19 = vpack.c.bf16 %v26_v17, %v25_v16  ;;  %v20_v21 = vld [vmem:[%s476_s0 + $0x28] sm:$0xff]  ;;  %v27_v22 = vld [vmem:[%s476_s0 + $0x60] sm:$0xff]  ;;  %v21_v25 = vld [vmem:[%s476_s0 + $0x30] sm:$0xff] }
   0x6   :  { %289 = vmatpush3.bf16.msra.mxu0 %v72_v11  ;;  %319 = vmatpush3.bf16.msra.mxu1 %v72_v11  ;;  %v30_v23 = vpack.c.bf16 %v20_v21, %v19_v20  ;;  %v34_v24 = vpack.c.bf16 %v27_v22, %v27_v22  ;;  %v22_v26 = vld [vmem:[%s476_s0 + $0x38] sm:$0xff]  ;;  %v408_v28 = vld [vmem:[%s477_s2] ss:$0 sm:$0xff] }
   0x7   :  { %v31_v27 = vpack.c.bf16 %v22_v26, %v21_v25 }
   0x9   :  { %291 = vmatmul.mubr.msk.bf16.vlgmr.msra.gmra.mrb[0].mxu0 %vm45_vm3, %v28_v12  ;;  %307 = vmatmul.mubr.msk.bf16.vlgmr.msra.gmra.mrb[0].mxu1 %vm45_vm3, %v32_v13 }
   0xa   :  { %294 = vmatprep.mubr.msk.bf16.mxu0 %vm325_vm2, %v323_v0  ;;  %310 = vmatprep.mubr.msk.bf16.mxu1 %vm325_vm2, %v323_v0 }
  0x11   :  { %295 = vmatmul.mubr.msk.bf16.gmra.mrb[4].mxu0 %vm45_vm3, %v29_v18  ;;  %311 = vmatmul.mubr.msk.bf16.gmra.mrb[4].mxu1 %vm45_vm3, %v33_v19 }
  0x12   :  { %298 = vmatprep.mubr.msk.bf16.mxu0 %vm325_vm2, %v323_v0  ;;  %314 = vmatprep.mubr.msk.bf16.mxu1 %vm325_vm2, %v323_v0 }
  0x19   :  { %299 = vmatmul.mubr.msk.bf16.gmra.mrb[8].mxu0 %vm45_vm3, %v30_v23  ;;  %315 = vmatmul.mubr.msk.bf16.gmra.mrb[8].mxu1 %vm45_vm3, %v34_v24 }
  0x1a   :  { %302 = vmatprep.mubr.msk.bf16.mxu0 %vm325_vm2, %v323_v0 }
  0x21   :  { %303 = vmatmul.mubr.msk.bf16.gmra.mrb[12].mxu0 %vm45_vm3, %v31_v27 }
  0xdc   :  { %v108_v29 = vpop.f32.mrb[0].mxu0  ;;  %v140_v30 = vpop.f32.mrb[0].mxu1 }
  0xdd   :  { %v109_v31 = vadd.f32 %v408_v28, %v108_v29  ;;  %v292_v32 = vpop.f32.mrb[1].mxu0  ;;  %v141_v33 = vadd.f32 %v408_v28, %v140_v30  ;;  %v308_v34 = vpop.f32.mrb[1].mxu1 }
  0xde   :  { %v111_v35 = vpop.f32.mrb[2].mxu0  ;;  %v143_v36 = vpop.f32.mrb[2].mxu1 }
  0xdf   :  { %v162_v37 = vmax.f32 %v109_v31, 0.0  ;;  %v112_v38 = vadd.f32 %v408_v28, %v111_v35  ;;  %v293_v39 = vpop.f32.mrb[3].mxu0  ;;  %v170_v40 = vmax.f32 %v141_v33, 0.0  ;;  %v144_v41 = vadd.f32 %v408_v28, %v143_v36  ;;  %v309_v42 = vpop.f32.mrb[3].mxu1 }
  0xe1   :  { %v267_v43 = vpack.c.bf16 %v162_v37, %v162_v37  ;;  %v163_v44 = vmax.f32 %v112_v38, 0.0  ;;  %v275_v45 = vpack.c.bf16 %v170_v40, %v170_v40  ;;  %v171_v46 = vmax.f32 %v144_v41, 0.0 }
  0xe3   :  { %229 = vst.msk [vmem:[%s478_s3] sm:$0xf] %vm228_vm4, %v267_v43  ;;  %v268_v47 = vpack.c.bf16 %v163_v44, %v163_v44  ;;  %237 = vst.msk [vmem:[%s478_s3 + $0x20] sm:$0xf] %vm228_vm4, %v275_v45  ;;  %v276_v48 = vpack.c.bf16 %v171_v46, %v171_v46 }
  0xe4   :  { %v116_v49 = vpop.f32.mrb[4].mxu0  ;;  %v148_v50 = vpop.f32.mrb[4].mxu1 }
  0xe5   :  { %230 = vst.msk [vmem:[%s478_s3 + $0x4] sm:$0xf] %vm228_vm4, %v268_v47  ;;  %v117_v51 = vadd.f32 %v408_v28, %v116_v49  ;;  %v296_v52 = vpop.f32.mrb[5].mxu0  ;;  %238 = vst.msk [vmem:[%s478_s3 + $0x24] sm:$0xf] %vm228_vm4, %v276_v48  ;;  %v149_v53 = vadd.f32 %v408_v28, %v148_v50  ;;  %v312_v54 = vpop.f32.mrb[5].mxu1 }
  0xe6   :  { %v119_v55 = vpop.f32.mrb[6].mxu0  ;;  %v151_v56 = vpop.f32.mrb[6].mxu1 }
  0xe7   :  { %v164_v57 = vmax.f32 %v117_v51, 0.0  ;;  %v120_v58 = vadd.f32 %v408_v28, %v119_v55  ;;  %v297_v59 = vpop.f32.mrb[7].mxu0  ;;  %v172_v60 = vmax.f32 %v149_v53, 0.0  ;;  %v152_v61 = vadd.f32 %v408_v28, %v151_v56  ;;  %v313_v62 = vpop.f32.mrb[7].mxu1 }
  0xe9   :  { %v269_v63 = vpack.c.bf16 %v164_v57, %v164_v57  ;;  %v165_v0 = vmax.f32 %v120_v58, 0.0  ;;  %v277_v1 = vpack.c.bf16 %v172_v60, %v172_v60  ;;  %v173_v2 = vmax.f32 %v152_v61, 0.0 }
  0xeb   :  { %231 = vst.msk [vmem:[%s478_s3 + $0x8] sm:$0xf] %vm228_vm4, %v269_v63  ;;  %v270_v3 = vpack.c.bf16 %v165_v0, %v165_v0  ;;  %239 = vst.msk [vmem:[%s478_s3 + $0x28] sm:$0xf] %vm228_vm4, %v277_v1  ;;  %v278_v4 = vpack.c.bf16 %v173_v2, %v173_v2 }
  0xec   :  { %v124_v5 = vpop.f32.mrb[8].mxu0  ;;  %v156_v6 = vpop.f32.mrb[8].mxu1 }
  0xed   :  { %232 = vst.msk [vmem:[%s478_s3 + $0xc] sm:$0xf] %vm228_vm4, %v270_v3  ;;  %v125_v7 = vadd.f32 %v408_v28, %v124_v5  ;;  %v300_v8 = vpop.f32.mrb[9].mxu0  ;;  %240 = vst.msk [vmem:[%s478_s3 + $0x2c] sm:$0xf] %vm228_vm4, %v278_v4  ;;  %v157_v9 = vadd.f32 %v408_v28, %v156_v6  ;;  %v316_v10 = vpop.f32.mrb[9].mxu1 }
  0xee   :  { %v127_v11 = vpop.f32.mrb[10].mxu0  ;;  %v159_v12 = vpop.f32.mrb[10].mxu1 }
  0xef   :  { %v166_v13 = vmax.f32 %v125_v7, 0.0  ;;  %v128_v14 = vadd.f32 %v408_v28, %v127_v11  ;;  %v301_v15 = vpop.f32.mrb[11].mxu0  ;;  %v174_v16 = vmax.f32 %v157_v9, 0.0  ;;  %v317_v17 = vpop.f32.mrb[11].mxu1 }
  0xf1   :  { %v271_v18 = vpack.c.bf16 %v166_v13, %v166_v13  ;;  %v167_v19 = vmax.f32 %v128_v14, 0.0  ;;  %v279_v20 = vpack.c.bf16 %v174_v16, %v174_v16 }
  0xf3   :  { %233 = vst.msk [vmem:[%s478_s3 + $0x10] sm:$0xf] %vm228_vm4, %v271_v18  ;;  %v272_v21 = vpack.c.bf16 %v167_v19, %v167_v19  ;;  %241 = vst.msk [vmem:[%s478_s3 + $0x30] sm:$0xf] %vm228_vm4, %v279_v20 }
  0xf4   :  { %v132_v22 = vpop.f32.mrb[12].mxu0 }
  0xf5   :  { %234 = vst.msk [vmem:[%s478_s3 + $0x14] sm:$0xf] %vm228_vm4, %v272_v21  ;;  %v133_v23 = vadd.f32 %v408_v28, %v132_v22  ;;  %v304_v24 = vpop.f32.mrb[13].mxu0 }
  0xf6   :  { %v135_v25 = vpop.f32.mrb[14].mxu0 }
  0xf7   :  { %v168_v26 = vmax.f32 %v133_v23, 0.0  ;;  %v136_v27 = vadd.f32 %v408_v28, %v135_v25  ;;  %v305_v29 = vpop.f32.mrb[15].mxu0 }
  0xf9   :  { %v273_v30 = vpack.c.bf16 %v168_v26, %v168_v26  ;;  %v169_v31 = vmax.f32 %v136_v27, 0.0 }
  0xfb   :  { %235 = vst.msk [vmem:[%s478_s3 + $0x18] sm:$0xf] %vm228_vm4, %v273_v30  ;;  %v274_v32 = vpack.c.bf16 %v169_v31, %v169_v31 }
  0xfd   :  { %236 = vst.msk [vmem:[%s478_s3 + $0x1c] sm:$0xf] %vm228_vm4, %v274_v32 }

</bundles_post_ra>
